<compile_context>
chip_gen: v7x
topology: tpu7x:2x2x1
jax: 0.10.0
libtpu: 0.0.40
codegen_flags: <defaults>
</compile_context>

<pallas_src>
import jax
import jax.numpy as jnp
from jax.experimental import pallas as pl
from jax.experimental.pallas import tpu as pltpu


def _round_up(x, m):
    return ((x + m - 1) // m) * m


def _vmem_capacity_bytes(default=64 * 1024 * 1024):
    """Physical VMEM per TensorCore; conservative default if query fails."""
    try:
        info = pltpu.get_tpu_info()
        return int(getattr(info, "vmem_capacity_bytes", default))
    except Exception:
        return default


def _linear_kernel(x_ref, w_ref, b_ref, o_ref):
    # x_ref: [tm, F], w_ref: [F, tn] (pre-transposed), b_ref: [1, tn] f32,
    # o_ref: [tm, tn]. Canonical MXU contraction; f32 accumulation.
    acc = jnp.dot(x_ref[...], w_ref[...], preferred_element_type=jnp.float32)
    o_ref[...] = (acc + b_ref[...]).astype(o_ref.dtype)


def prepare_params(weight, bias, param_dtype=jnp.bfloat16):
    """One-time (init-time) parameter prep: pad classes to a multiple of 128,
    pre-transpose to [F, C_pad], and cast the weight to the compute dtype.
    Padded classes are zero so they cannot leak into real logits."""
    C, F = weight.shape
    C_pad = _round_up(max(C, 128), 128)
    w_t = jnp.pad(weight, ((0, C_pad - C), (0, 0))).T.astype(param_dtype)   # [F, C_pad]
    b_pad = jnp.pad(bias, (0, C_pad - C)).astype(jnp.float32).reshape(1, C_pad)
    return w_t, b_pad


def _choose_tiles(B, F, C_pad, x_isz, w_isz, o_isz, budget):
    """Pick (tm, tn): class tile kept whole when the single-buffered weight fits
    half the budget, otherwise split; batch tile = largest whose double-buffered
    x/out tiles + resident weight fit the budget."""
    sub = 16 if x_isz <= 2 else 8      # sublane packing multiple (bf16 -> 16)

    tn = C_pad
    while tn > 128 and F * tn * w_isz > budget // 2:
        tn = _round_up(tn // 2, 128)

    n_buf_w = 1 if tn == C_pad else 2          # single buffer when grid-invariant
    resident = n_buf_w * (F * tn * w_isz + tn * 4)

    cands = [c for c in (1024, 512, 256, 128, 64, 32, 16, 8) if c % sub == 0]
    tm = cands[-1]
    for cand in cands:
        tile_bytes = 2 * cand * (F * x_isz + tn * o_isz)   # x + out, double-buffered
        if resident + tile_bytes <= budget:
            tm = cand
            break
    tm = max(sub, min(tm, _round_up(B, sub)))
    return tm, tn, sub


def _spec(shape, index_map, *, single_buffer=False):
    if single_buffer:
        try:
            return pl.BlockSpec(shape, index_map, pipeline_mode=pl.Buffered(1))
        except TypeError:
            pass  # pipeline_mode unsupported: fall back to default buffering
    return pl.BlockSpec(shape, index_map)


def linear_classifier(features, w_pad, b_pad, num_classes, *,
                      trim=True, out_dtype=jnp.float32):
    """features: [B, F]; w_pad: [F, C_pad]; b_pad: [1, C_pad] -> logits."""
    B, F = features.shape
    F2, C_pad = w_pad.shape
    assert F == F2 and C_pad % 128 == 0 and b_pad.shape == (1, C_pad)

    if features.dtype != w_pad.dtype:
        # Upstream should ideally already produce the compute dtype (e.g. bf16).
        features = features.astype(w_pad.dtype)

    x_isz = jnp.dtype(features.dtype).itemsize
    w_isz = jnp.dtype(w_pad.dtype).itemsize
    o_isz = jnp.dtype(out_dtype).itemsize

    vmem_cap = _vmem_capacity_bytes()
    budget = int(vmem_cap * 0.7)        # ~90 MiB v5e/v6e, ~45 MiB v7x

    tm, tn, sub = _choose_tiles(B, F, C_pad, x_isz, w_isz, o_isz, budget)

    # Only a tiny sublane-multiple pad (<= 15 rows), never a full-tile pad.
    B_pad = _round_up(B, sub)
    if B_pad != B:
        features = jnp.pad(features, ((0, B_pad - B), (0, 0)))

    grid_m = pl.cdiv(B_pad, tm)
    grid_n = pl.cdiv(C_pad, tn)
    single = (grid_n == 1)              # weight/bias grid-invariant -> 1 buffer

    def _call(single_buffer):
        return pl.pallas_call(
            _linear_kernel,
            out_shape=jax.ShapeDtypeStruct((B_pad, C_pad), out_dtype),
            grid_spec=pltpu.PrefetchScalarGridSpec(
                num_scalar_prefetch=0,
                grid=(grid_m, grid_n),
                in_specs=[
                    pl.BlockSpec((tm, F), lambda i, j: (i, 0)),   # batch tile (pipelined)
                    _spec((F, tn), lambda i, j: (0, j), single_buffer=single_buffer),
                    _spec((1, tn), lambda i, j: (0, j), single_buffer=single_buffer),
                ],
                out_specs=pl.BlockSpec((tm, tn), lambda i, j: (i, j)),
            ),
            compiler_params=pltpu.CompilerParams(
                dimension_semantics=("parallel", "parallel"),
                vmem_limit_bytes=int(min(vmem_cap, budget + (16 << 20))),
            ),
            cost_estimate=pl.CostEstimate(
                flops=2 * B_pad * F * C_pad,
                bytes_accessed=(B_pad * F * x_isz + C_pad * F * w_isz
                                + C_pad * 4 + B_pad * C_pad * o_isz),
                transcendentals=0,
            ),
        )(features, w_pad, b_pad)

    try:
        out = _call(single)
    except Exception:
        if not single:
            raise
        out = _call(False)              # safety net: default double buffering

    if trim:
        # NOTE: this slice is a separate XLA copy pass over the logits; pass
        # trim=False and slice at the final consumer/host boundary to avoid it.
        return out[:B, :num_classes]
    return out


if __name__ == "__main__":
    # Small shapes consistent with nn.Linear(feat_dim, num_classes).
    B, FEAT_DIM, NUM_CLASSES = 8, 128, 10

    key = jax.random.PRNGKey(0)
    k_x, k_w, k_b = jax.random.split(key, 3)

    features = jax.random.normal(k_x, (B, FEAT_DIM), dtype=jnp.float32)
    bound = 1.0 / (FEAT_DIM ** 0.5)
    weight = jax.random.uniform(k_w, (NUM_CLASSES, FEAT_DIM),
                                minval=-bound, maxval=bound, dtype=jnp.float32)
    bias = jax.random.uniform(k_b, (NUM_CLASSES,),
                              minval=-bound, maxval=bound, dtype=jnp.float32)

    ref = features @ weight.T + bias

    # Exact-precision path (f32 params) -> tight tolerance.
    w32, b32 = prepare_params(weight, bias, param_dtype=jnp.float32)
    out32 = jax.block_until_ready(linear_classifier(features, w32, b32, NUM_CLASSES))
    assert out32.shape == (B, NUM_CLASSES)
    assert jnp.allclose(out32, ref, atol=1e-5, rtol=1e-5)

    # Recommended deployment path (bf16 params + bf16 features, f32 accumulate).
    wbf, bbf = prepare_params(weight, bias, param_dtype=jnp.bfloat16)
    outbf = jax.block_until_ready(
        linear_classifier(features.astype(jnp.bfloat16), wbf, bbf, NUM_CLASSES))
    assert outbf.shape == (B, NUM_CLASSES)
    assert jnp.allclose(outbf, ref, atol=5e-2, rtol=5e-2)

    print("KERNEL_OK")
</pallas_src>

<mosaic_0001>
module attributes {stable_mosaic.version = 11 : i64} {
  func.func @_linear_kernel(%arg0: i32, %arg1: i32, %arg2: memref<8x128xf32, #tpu.memory_space<vmem>>, %arg3: memref<128x128xf32, #tpu.memory_space<vmem>>, %arg4: memref<1x128xf32, #tpu.memory_space<vmem>>, %arg5: memref<8x128xf32, #tpu.memory_space<vmem>>) attributes {dimension_semantics = [#tpu.dimension_semantics<parallel>, #tpu.dimension_semantics<parallel>], iteration_bounds = array<i64: 1, 1>, scalar_prefetch = 0 : i64, scratch_operands = 0 : i64, tpu.core_type = #tpu.core_type<tc>, window_params = [{transform_indices = @transform_0, window_bounds = array<i64: 8, 128>}, {pipeline_mode = #tpu.pipeline_mode<synchronous>, transform_indices = @transform_1, window_bounds = array<i64: 128, 128>}, {pipeline_mode = #tpu.pipeline_mode<synchronous>, transform_indices = @transform_2, window_bounds = array<i64: 1, 128>}, {transform_indices = @transform_3, window_bounds = array<i64: 8, 128>}]} {
    %c0 = arith.constant 0 : index
    %c0_0 = arith.constant 0 : index
    %0 = vector.load %arg2[%c0, %c0_0] : memref<8x128xf32, #tpu.memory_space<vmem>>, vector<8x128xf32>
    %c0_1 = arith.constant 0 : index
    %c0_2 = arith.constant 0 : index
    %1 = vector.load %arg3[%c0_1, %c0_2] : memref<128x128xf32, #tpu.memory_space<vmem>>, vector<128x128xf32>
    %cst = arith.constant dense<0.000000e+00> : vector<8x128xf32>
    %2 = tpu.matmul %0, %1, %cst {dimension_numbers = #tpu.dot_dimension_numbers<[1], [0], [0], [1], [0, 0, 1, 1], [], []>} : vector<8x128xf32>, vector<128x128xf32>, vector<8x128xf32> -> vector<8x128xf32>
    %c0_3 = arith.constant 0 : index
    %c0_4 = arith.constant 0 : index
    %3 = vector.load %arg4[%c0_3, %c0_4] : memref<1x128xf32, #tpu.memory_space<vmem>>, vector<1x128xf32>
    %4 = vector.broadcast %3 : vector<1x128xf32> to vector<8x128xf32>
    %5 = arith.addf %2, %4 : vector<8x128xf32>
    %c0_5 = arith.constant 0 : index
    %c0_6 = arith.constant 0 : index
    %6 = vector.load %arg5[%c0_5, %c0_6] : memref<8x128xf32, #tpu.memory_space<vmem>>, vector<8x128xf32>
    tpu.vector_store %arg5[%c0_5, %c0_6], %5 {strides = array<i32>} : memref<8x128xf32, #tpu.memory_space<vmem>>, vector<8x128xf32>,
    return
  }
  func.func @transform_0(%arg0: i32, %arg1: i32) -> (i32, i32) {
    %c0_i32 = arith.constant 0 : i32
    %c0_i32_0 = arith.constant 0 : i32
    return %arg0, %c0_i32 : i32, i32
  }
  func.func @transform_1(%arg0: i32, %arg1: i32) -> (i32, i32) {
    %c0_i32 = arith.constant 0 : i32
    %c0_i32_0 = arith.constant 0 : i32
    return %c0_i32, %arg1 : i32, i32
  }
  func.func @transform_2(%arg0: i32, %arg1: i32) -> (i32, i32) {
    %c0_i32 = arith.constant 0 : i32
    %c0_i32_0 = arith.constant 0 : i32
    return %c0_i32, %arg1 : i32, i32
  }
  func.func @transform_3(%arg0: i32, %arg1: i32) -> (i32, i32) {
    %c0_i32 = arith.constant 0 : i32
    return %arg0, %arg1 : i32, i32
  }
}

module attributes {stable_mosaic.version = 11 : i64} {
  func.func @_linear_kernel(%arg0: i32, %arg1: i32, %arg2: memref<8x128xf32, #tpu.memory_space<vmem>>, %arg3: memref<128x128xf32, #tpu.memory_space<vmem>>, %arg4: memref<1x128xf32, #tpu.memory_space<vmem>>, %arg5: memref<8x128xf32, #tpu.memory_space<vmem>>) attributes {dimension_semantics = [#tpu.dimension_semantics<parallel>, #tpu.dimension_semantics<parallel>], iteration_bounds = array<i64: 1, 1>, scalar_prefetch = 0 : i64, scratch_operands = 0 : i64, tpu.core_type = #tpu.core_type<tc>, window_params = [{transform_indices = @transform_0, window_bounds = array<i64: 8, 128>}, {transform_indices = @transform_1, window_bounds = array<i64: 128, 128>}, {transform_indices = @transform_2, window_bounds = array<i64: 1, 128>}, {transform_indices = @transform_3, window_bounds = array<i64: 8, 128>}]} {
    %c0 = arith.constant 0 : index
    %c0_0 = arith.constant 0 : index
    %0 = vector.load %arg2[%c0, %c0_0] : memref<8x128xf32, #tpu.memory_space<vmem>>, vector<8x128xf32>
    %c0_1 = arith.constant 0 : index
    %c0_2 = arith.constant 0 : index
    %1 = vector.load %arg3[%c0_1, %c0_2] : memref<128x128xf32, #tpu.memory_space<vmem>>, vector<128x128xf32>
    %cst = arith.constant dense<0.000000e+00> : vector<8x128xf32>
    %2 = tpu.matmul %0, %1, %cst {dimension_numbers = #tpu.dot_dimension_numbers<[1], [0], [0], [1], [0, 0, 1, 1], [], []>} : vector<8x128xf32>, vector<128x128xf32>, vector<8x128xf32> -> vector<8x128xf32>
    %c0_3 = arith.constant 0 : index
    %c0_4 = arith.constant 0 : index
    %3 = vector.load %arg4[%c0_3, %c0_4] : memref<1x128xf32, #tpu.memory_space<vmem>>, vector<1x128xf32>
    %4 = vector.broadcast %3 : vector<1x128xf32> to vector<8x128xf32>
    %5 = arith.addf %2, %4 : vector<8x128xf32>
    %c0_5 = arith.constant 0 : index
    %c0_6 = arith.constant 0 : index
    %6 = vector.load %arg5[%c0_5, %c0_6] : memref<8x128xf32, #tpu.memory_space<vmem>>, vector<8x128xf32>
    tpu.vector_store %arg5[%c0_5, %c0_6], %5 {strides = array<i32>} : memref<8x128xf32, #tpu.memory_space<vmem>>, vector<8x128xf32>,
    return
  }
  func.func @transform_0(%arg0: i32, %arg1: i32) -> (i32, i32) {
    %c0_i32 = arith.constant 0 : i32
    %c0_i32_0 = arith.constant 0 : i32
    return %arg0, %c0_i32 : i32, i32
  }
  func.func @transform_1(%arg0: i32, %arg1: i32) -> (i32, i32) {
    %c0_i32 = arith.constant 0 : i32
    %c0_i32_0 = arith.constant 0 : i32
    return %c0_i32, %arg1 : i32, i32
  }
  func.func @transform_2(%arg0: i32, %arg1: i32) -> (i32, i32) {
    %c0_i32 = arith.constant 0 : i32
    %c0_i32_0 = arith.constant 0 : i32
    return %c0_i32, %arg1 : i32, i32
  }
  func.func @transform_3(%arg0: i32, %arg1: i32) -> (i32, i32) {
    %c0_i32 = arith.constant 0 : i32
    return %arg0, %arg1 : i32, i32
  }
}

</mosaic_0001>

<bundles_post_ra>
// kernel: tpu_custom_call.1
= control target key start
LH: loop header
LB: loop body
LE: loop exit
PB: predicated region body
PF: predicated region fallthrough
CT: control target
= control target key end

     0   :  { %8 = vsyncpa [#allocation3], 0  ;;  %s383_s0 = inlined_call_operand.hbm [shape: f32[8,128], index: 0, kind: input, shape index: {}]   ;;  %s384_s1 = inlined_call_operand.hbm [shape: f32[128,128], index: 1, kind: input, shape index: {}]   ;;  %s385_s2 = inlined_call_operand.vmem [shape: f32[1,128], index: 2, kind: input, shape index: {}]   ;;  %s386_s3 = inlined_call_operand.hbm [shape: f32[8,128], index: 3, kind: output, shape index: {}]  }
   0x1   :  { %9 = vsyncpa [#allocation6], 0 }
   0x2   :  { %10 = vsyncpa [#allocation4], 0  ;;  %s309_s12 = smov [#allocation2]   ;;  %s310_s14 = smov [#allocation5]  }
   0x3   :  { %s17_s13 = sshll.u32 %s309_s12, 4  ;;  %s26_s15 = sshll.u32 %s310_s14, 4  ;;  %s18_s13 = int_to_ptr.vmem [resolvable:$true] %s17_s13  ;;  %s337_s15 = int_to_ptr.vmem [resolvable:$true] %s26_s15 }
   0x4   :  { %s237_s18 = scalar_lea.hbm %s383_s0, 128 }
   0x5   :  { %p238_p0 = scmp.ne.s32.totalorder %s383_s0, %s237_s18  ;;  %p241_p1 = scmp.lt.u32.totalorder %s237_s18, %s383_s0 }
   0x7   :  { %p243_p2 = pnand %p241_p1, %p238_p0 }
   0x9   :  { %246 = shalt.err (!%p243_p2)
}
   0xa   :  { %s247_s23 = scalar_lea.vmem %s18_s13, 128  ;;  %p252_p4 = scmp.lt.s32.totalorder %s18_s13, %s18_s13 }
   0xb   :  { %p248_p3 = scmp.ne.s32.totalorder %s18_s13, %s247_s23  ;;  %p253_p5 = scmp.lt.s32.totalorder %s247_s23, %s247_s23 }
   0xd   :  { %p254_p6 = por %p253_p5, %p252_p4 }
   0xf   :  { %p255_p7 = pnand %p254_p6, %p248_p3 }
  0x11   :  { %258 = shalt.err (!%p255_p7)
}
  0x12   :  { %20 = dma.hbm_to_vmem [thread:$0]  %s383_s0, 128, %s18_s13, [#allocation3]  }
  0x13   :  { %s259_s28 = scalar_lea.hbm %s384_s1, 2048 }
  0x14   :  { %p260_p8 = scmp.ne.s32.totalorder %s384_s1, %s259_s28  ;;  %p263_p9 = scmp.lt.u32.totalorder %s259_s28, %s384_s1 }
  0x16   :  { %p265_p10 = pnand %p263_p9, %p260_p8 }
  0x18   :  { %268 = shalt.err (!%p265_p10)
}
  0x19   :  { %s269_s6 = scalar_lea.vmem %s337_s15, 2048  ;;  %p274_p12 = scmp.lt.s32.totalorder %s337_s15, %s337_s15 }
  0x1a   :  { %p270_p11 = scmp.ne.s32.totalorder %s337_s15, %s269_s6  ;;  %p275_p13 = scmp.lt.s32.totalorder %s269_s6, %s269_s6 }
  0x1c   :  { %p276_p0 = por %p275_p13, %p274_p12 }
  0x1e   :  { %p277_p1 = pnand %p276_p0, %p270_p11 }
  0x20   :  { %280 = shalt.err (!%p277_p1)
}
  0x21   :  { %s311_s0 = smov 128   ;;  %s312_s7 = smov 8  }
  0x22   :  { %32 = dma.hbm_to_vmem [thread:$0]  %s384_s1, 2048, %s337_s15, [#allocation6], %s311_s0, %s311_s0, %s312_s7  }
  0x23   :  { %303 = dma.done.wait [#allocation3], 128  }
  0x24   :  { %304 = vsyncadd [#allocation3], 4294967168 }
  0x25   :  { %305 = dma.done.wait [#allocation6], 2048  }
  0x26   :  { %306 = vsyncadd [#allocation6], 4294965248  ;;  %v313_v0 = vmov 0.0|0.0   ;;  %vm314_vm0 = vmmov 0   ;;  %v315_v1 = vmov 0.0   ;;  %v42_v2 = vld [vmem:[#allocation5] sm:$0xff] }
  0x27   :  { %205 = vmatprep.subr.bf16.mxu0 %v313_v0  ;;  %202 = vmatprep.mubr.msk.f32.mxu0 %vm314_vm0, %v315_v1  ;;  %v43_v3 = vld [vmem:[#allocation5 + $0x8] sm:$0xff]  ;;  %v44_v4 = vld [vmem:[#allocation5 + $0x10] sm:$0xff]  ;;  %v45_v6 = vld [vmem:[#allocation5 + $0x18] sm:$0xff]  ;;  %s316_s11 = smov [#allocation7]  }
  0x28   :  { %v206_v5 = vpack.c.bf16 %v43_v3, %v42_v2  ;;  %v209_v7 = vpack.c.bf16 %v45_v6, %v44_v4  ;;  %v46_v8 = vld [vmem:[#allocation5 + $0x20] sm:$0xff]  ;;  %v47_v9 = vld [vmem:[#allocation5 + $0x28] sm:$0xff]  ;;  %v48_v11 = vld [vmem:[#allocation5 + $0x30] sm:$0xff]  ;;  %s142_s12 = sshll.u32 %s316_s11, 4  ;;  %s143_s12 = int_to_ptr.vmem [resolvable:$true] %s142_s12 }
  0x29   :  { %v212_v10 = vpack.c.bf16 %v47_v9, %v46_v8  ;;  %v49_v12 = vld [vmem:[#allocation5 + $0x38] sm:$0xff]  ;;  %v50_v14 = vld [vmem:[#allocation5 + $0x40] sm:$0xff]  ;;  %v51_v15 = vld [vmem:[#allocation5 + $0x48] sm:$0xff]  ;;  %s281_s13 = scalar_lea.vmem %s143_s12, 128  ;;  %p286_p3 = scmp.lt.s32.totalorder %s143_s12, %s143_s12 }
  0x2a   :  { %207 = vmatpush3.bf16.msra.mxu0 %v206_v5  ;;  %v215_v13 = vpack.c.bf16 %v49_v12, %v48_v11  ;;  %v218_v16 = vpack.c.bf16 %v51_v15, %v50_v14  ;;  %v52_v17 = vld [vmem:[#allocation5 + $0x50] sm:$0xff]  ;;  %v53_v18 = vld [vmem:[#allocation5 + $0x58] sm:$0xff]  ;;  %v54_v20 = vld [vmem:[#allocation5 + $0x60] sm:$0xff]  ;;  %p282_p2 = scmp.ne.s32.totalorder %s143_s12, %s281_s13  ;;  %p287_p4 = scmp.lt.s32.totalorder %s281_s13, %s281_s13 }
  0x2b   :  { %208 = vmatprep.subr.bf16.mxu0 %v313_v0  ;;  %v221_v19 = vpack.c.bf16 %v53_v18, %v52_v17  ;;  %v55_v21 = vld [vmem:[#allocation5 + $0x68] sm:$0xff]  ;;  %v56_v23 = vld [vmem:[#allocation5 + $0x70] sm:$0xff]  ;;  %v57_v24 = vld [vmem:[#allocation5 + $0x78] sm:$0xff] }
  0x2c   :  { %v224_v22 = vpack.c.bf16 %v55_v21, %v54_v20  ;;  %v227_v25 = vpack.c.bf16 %v57_v24, %v56_v23  ;;  %v41_v26 = vld [vmem:[#allocation2] sm:$0xff]  ;;  %p288_p5 = por %p287_p4, %p286_p3 }
  0x2d   :  { %v152_v27 = vld [vmem:[%s385_s2] ss:$0 sm:$0xff] }
  0x2e   :  { %210 = vmatpush3.bf16.msra.mxu0 %v209_v7  ;;  %p289_p6 = pnand %p288_p5, %p282_p2 }
  0x2f   :  { %211 = vmatprep.subr.bf16.mxu0 %v313_v0 }
  0x32   :  { %213 = vmatpush3.bf16.msra.mxu0 %v212_v10 }
  0x33   :  { %214 = vmatprep.subr.bf16.mxu0 %v313_v0 }
  0x36   :  { %216 = vmatpush3.bf16.msra.mxu0 %v215_v13 }
  0x37   :  { %217 = vmatprep.subr.bf16.mxu0 %v313_v0 }
  0x3a   :  { %219 = vmatpush3.bf16.msra.mxu0 %v218_v16 }
  0x3b   :  { %220 = vmatprep.subr.bf16.mxu0 %v313_v0 }
  0x3e   :  { %222 = vmatpush3.bf16.msra.mxu0 %v221_v19 }
  0x3f   :  { %223 = vmatprep.subr.bf16.mxu0 %v313_v0 }
  0x42   :  { %225 = vmatpush3.bf16.msra.mxu0 %v224_v22 }
  0x43   :  { %226 = vmatprep.subr.bf16.mxu0 %v313_v0 }
  0x46   :  { %228 = vmatpush3.bf16.msra.mxu0 %v227_v25 }
  0x49   :  { %203 = vmatmul.mubr.f32.vlgmr.msra.gmra.mrb[0].mxu0 %v41_v26 }
 0x11c   :  { %v131_v28 = vpop.f32.mrb[0].mxu0 }
 0x11d   :  { %v132_v29 = vadd.f32 %v152_v27, %v131_v28  ;;  %v204_v30 = vpop.f32.mrb[1].mxu0 }
 0x11f   :  { %135 = vst [vmem:[#allocation7] sm:$0xff] %v132_v29 }
 0x120   :  { %292 = shalt.err (!%p289_p6)
}
 0x121   :  { %s293_s16 = scalar_lea.hbm %s386_s3, 128 }
 0x122   :  { %p294_p7 = scmp.ne.s32.totalorder %s386_s3, %s293_s16  ;;  %p297_p8 = scmp.lt.u32.totalorder %s293_s16, %s386_s3 }
 0x124   :  { %p299_p9 = pnand %p297_p8, %p294_p7 }
 0x126   :  { %302 = shalt.err (!%p299_p9)
}
 0x127   :  { %145 = dma.vmem_to_hbm [thread:$0]  %s143_s12, 128, %s386_s3, [#allocation4]  }
 0x128   :  { %307 = dma.done.wait [#allocation4], 128  }
 0x129   :  { %308 = vsyncadd [#allocation4], 4294967168 }
 0x12a   :  { %149 = vsyncpa [#allocation3], 1 }
 0x12b   :  { %150 = vsyncpa [#allocation6], 1 }
 0x12c   :  { %151 = vsyncpa [#allocation4], 1 }

// kernel: tpu_custom_call.1
= control target key start
LH: loop header
LB: loop body
LE: loop exit
PB: predicated region body
PF: predicated region fallthrough
CT: control target
= control target key end

     0   :  { %8 = vsyncpa [#allocation3], 0  ;;  %s383_s0 = inlined_call_operand.hbm [shape: f32[8,128], index: 0, kind: input, shape index: {}]   ;;  %s384_s1 = inlined_call_operand.hbm [shape: f32[128,128], index: 1, kind: input, shape index: {}]   ;;  %s385_s2 = inlined_call_operand.vmem [shape: f32[1,128], index: 2, kind: input, shape index: {}]   ;;  %s386_s3 = inlined_call_operand.hbm [shape: f32[8,128], index: 3, kind: output, shape index: {}]  }
   0x1   :  { %9 = vsyncpa [#allocation6], 0 }
   0x2   :  { %10 = vsyncpa [#allocation4], 0  ;;  %s309_s12 = smov [#allocation2]   ;;  %s310_s14 = smov [#allocation5]  }
   0x3   :  { %s17_s13 = sshll.u32 %s309_s12, 4  ;;  %s26_s15 = sshll.u32 %s310_s14, 4  ;;  %s18_s13 = int_to_ptr.vmem [resolvable:$true] %s17_s13  ;;  %s337_s15 = int_to_ptr.vmem [resolvable:$true] %s26_s15 }
   0x4   :  { %s237_s18 = scalar_lea.hbm %s383_s0, 128 }
   0x5   :  { %p238_p0 = scmp.ne.s32.totalorder %s383_s0, %s237_s18  ;;  %p241_p1 = scmp.lt.u32.totalorder %s237_s18, %s383_s0 }
   0x7   :  { %p243_p2 = pnand %p241_p1, %p238_p0 }
   0x9   :  { %246 = shalt.err (!%p243_p2)
}
   0xa   :  { %s247_s23 = scalar_lea.vmem %s18_s13, 128  ;;  %p252_p4 = scmp.lt.s32.totalorder %s18_s13, %s18_s13 }
   0xb   :  { %p248_p3 = scmp.ne.s32.totalorder %s18_s13, %s247_s23  ;;  %p253_p5 = scmp.lt.s32.totalorder %s247_s23, %s247_s23 }
   0xd   :  { %p254_p6 = por %p253_p5, %p252_p4 }
   0xf   :  { %p255_p7 = pnand %p254_p6, %p248_p3 }
  0x11   :  { %258 = shalt.err (!%p255_p7)
}
  0x12   :  { %20 = dma.hbm_to_vmem [thread:$0]  %s383_s0, 128, %s18_s13, [#allocation3]  }
  0x13   :  { %s259_s28 = scalar_lea.hbm %s384_s1, 2048 }
  0x14   :  { %p260_p8 = scmp.ne.s32.totalorder %s384_s1, %s259_s28  ;;  %p263_p9 = scmp.lt.u32.totalorder %s259_s28, %s384_s1 }
  0x16   :  { %p265_p10 = pnand %p263_p9, %p260_p8 }
  0x18   :  { %268 = shalt.err (!%p265_p10)
}
  0x19   :  { %s269_s6 = scalar_lea.vmem %s337_s15, 2048  ;;  %p274_p12 = scmp.lt.s32.totalorder %s337_s15, %s337_s15 }
  0x1a   :  { %p270_p11 = scmp.ne.s32.totalorder %s337_s15, %s269_s6  ;;  %p275_p13 = scmp.lt.s32.totalorder %s269_s6, %s269_s6 }
  0x1c   :  { %p276_p0 = por %p275_p13, %p274_p12 }
  0x1e   :  { %p277_p1 = pnand %p276_p0, %p270_p11 }
  0x20   :  { %280 = shalt.err (!%p277_p1)
}
  0x21   :  { %s311_s0 = smov 128   ;;  %s312_s7 = smov 8  }
  0x22   :  { %32 = dma.hbm_to_vmem [thread:$0]  %s384_s1, 2048, %s337_s15, [#allocation6], %s311_s0, %s311_s0, %s312_s7  }
  0x23   :  { %303 = dma.done.wait [#allocation3], 128  }
  0x24   :  { %304 = vsyncadd [#allocation3], 4294967168 }
  0x25   :  { %305 = dma.done.wait [#allocation6], 2048  }
  0x26   :  { %306 = vsyncadd [#allocation6], 4294965248  ;;  %v313_v0 = vmov 0.0|0.0   ;;  %vm314_vm0 = vmmov 0   ;;  %v315_v1 = vmov 0.0   ;;  %v42_v2 = vld [vmem:[#allocation5] sm:$0xff] }
  0x27   :  { %205 = vmatprep.subr.bf16.mxu0 %v313_v0  ;;  %202 = vmatprep.mubr.msk.f32.mxu0 %vm314_vm0, %v315_v1  ;;  %v43_v3 = vld [vmem:[#allocation5 + $0x8] sm:$0xff]  ;;  %v44_v4 = vld [vmem:[#allocation5 + $0x10] sm:$0xff]  ;;  %v45_v6 = vld [vmem:[#allocation5 + $0x18] sm:$0xff]  ;;  %s316_s11 = smov [#allocation7]  }
  0x28   :  { %v206_v5 = vpack.c.bf16 %v43_v3, %v42_v2  ;;  %v209_v7 = vpack.c.bf16 %v45_v6, %v44_v4  ;;  %v46_v8 = vld [vmem:[#allocation5 + $0x20] sm:$0xff]  ;;  %v47_v9 = vld [vmem:[#allocation5 + $0x28] sm:$0xff]  ;;  %v48_v11 = vld [vmem:[#allocation5 + $0x30] sm:$0xff]  ;;  %s142_s12 = sshll.u32 %s316_s11, 4  ;;  %s143_s12 = int_to_ptr.vmem [resolvable:$true] %s142_s12 }
  0x29   :  { %v212_v10 = vpack.c.bf16 %v47_v9, %v46_v8  ;;  %v49_v12 = vld [vmem:[#allocation5 + $0x38] sm:$0xff]  ;;  %v50_v14 = vld [vmem:[#allocation5 + $0x40] sm:$0xff]  ;;  %v51_v15 = vld [vmem:[#allocation5 + $0x48] sm:$0xff]  ;;  %s281_s13 = scalar_lea.vmem %s143_s12, 128  ;;  %p286_p3 = scmp.lt.s32.totalorder %s143_s12, %s143_s12 }
  0x2a   :  { %207 = vmatpush3.bf16.msra.mxu0 %v206_v5  ;;  %v215_v13 = vpack.c.bf16 %v49_v12, %v48_v11  ;;  %v218_v16 = vpack.c.bf16 %v51_v15, %v50_v14  ;;  %v52_v17 = vld [vmem:[#allocation5 + $0x50] sm:$0xff]  ;;  %v53_v18 = vld [vmem:[#allocation5 + $0x58] sm:$0xff]  ;;  %v54_v20 = vld [vmem:[#allocation5 + $0x60] sm:$0xff]  ;;  %p282_p2 = scmp.ne.s32.totalorder %s143_s12, %s281_s13  ;;  %p287_p4 = scmp.lt.s32.totalorder %s281_s13, %s281_s13 }
  0x2b   :  { %208 = vmatprep.subr.bf16.mxu0 %v313_v0  ;;  %v221_v19 = vpack.c.bf16 %v53_v18, %v52_v17  ;;  %v55_v21 = vld [vmem:[#allocation5 + $0x68] sm:$0xff]  ;;  %v56_v23 = vld [vmem:[#allocation5 + $0x70] sm:$0xff]  ;;  %v57_v24 = vld [vmem:[#allocation5 + $0x78] sm:$0xff] }
  0x2c   :  { %v224_v22 = vpack.c.bf16 %v55_v21, %v54_v20  ;;  %v227_v25 = vpack.c.bf16 %v57_v24, %v56_v23  ;;  %v41_v26 = vld [vmem:[#allocation2] sm:$0xff]  ;;  %p288_p5 = por %p287_p4, %p286_p3 }
  0x2d   :  { %v152_v27 = vld [vmem:[%s385_s2] ss:$0 sm:$0xff] }
  0x2e   :  { %210 = vmatpush3.bf16.msra.mxu0 %v209_v7  ;;  %p289_p6 = pnand %p288_p5, %p282_p2 }
  0x2f   :  { %211 = vmatprep.subr.bf16.mxu0 %v313_v0 }
  0x32   :  { %213 = vmatpush3.bf16.msra.mxu0 %v212_v10 }
  0x33   :  { %214 = vmatprep.subr.bf16.mxu0 %v313_v0 }
  0x36   :  { %216 = vmatpush3.bf16.msra.mxu0 %v215_v13 }
  0x37   :  { %217 = vmatprep.subr.bf16.mxu0 %v313_v0 }
  0x3a   :  { %219 = vmatpush3.bf16.msra.mxu0 %v218_v16 }
  0x3b   :  { %220 = vmatprep.subr.bf16.mxu0 %v313_v0 }
  0x3e   :  { %222 = vmatpush3.bf16.msra.mxu0 %v221_v19 }
  0x3f   :  { %223 = vmatprep.subr.bf16.mxu0 %v313_v0 }
  0x42   :  { %225 = vmatpush3.bf16.msra.mxu0 %v224_v22 }
  0x43   :  { %226 = vmatprep.subr.bf16.mxu0 %v313_v0 }
  0x46   :  { %228 = vmatpush3.bf16.msra.mxu0 %v227_v25 }
  0x49   :  { %203 = vmatmul.mubr.f32.vlgmr.msra.gmra.mrb[0].mxu0 %v41_v26 }
 0x11c   :  { %v131_v28 = vpop.f32.mrb[0].mxu0 }
 0x11d   :  { %v132_v29 = vadd.f32 %v152_v27, %v131_v28  ;;  %v204_v30 = vpop.f32.mrb[1].mxu0 }
 0x11f   :  { %135 = vst [vmem:[#allocation7] sm:$0xff] %v132_v29 }
 0x120   :  { %292 = shalt.err (!%p289_p6)
}
 0x121   :  { %s293_s16 = scalar_lea.hbm %s386_s3, 128 }
 0x122   :  { %p294_p7 = scmp.ne.s32.totalorder %s386_s3, %s293_s16  ;;  %p297_p8 = scmp.lt.u32.totalorder %s293_s16, %s386_s3 }
 0x124   :  { %p299_p9 = pnand %p297_p8, %p294_p7 }
 0x126   :  { %302 = shalt.err (!%p299_p9)
}
 0x127   :  { %145 = dma.vmem_to_hbm [thread:$0]  %s143_s12, 128, %s386_s3, [#allocation4]  }
 0x128   :  { %307 = dma.done.wait [#allocation4], 128  }
 0x129   :  { %308 = vsyncadd [#allocation4], 4294967168 }
 0x12a   :  { %149 = vsyncpa [#allocation3], 1 }
 0x12b   :  { %150 = vsyncpa [#allocation6], 1 }
 0x12c   :  { %151 = vsyncpa [#allocation4], 1 }

</bundles_post_ra>
